<compile_context>
chip_gen: v5e
topology: v5e:2x2
jax: 0.10.0
libtpu: 0.0.40
codegen_flags: <defaults>
</compile_context>

<pallas_src>
import jax
import jax.numpy as jnp
from jax import lax
from jax.experimental import pallas as pl
from jax.experimental.pallas import tpu as pltpu


def _make_pooling_kernel(pool_size: int, H: int, W: int):
    pad = pool_size // 2

    def pooling_kernel(x_ref, inv_ref, o_ref):
        # x_ref: (H, W, C) NHWC block; C is the lane dimension.
        xf = x_ref[...].astype(jnp.float32)

        # Separable zero-padded pool_size-tap sums: vertical (H), then
        # horizontal (W).  Shifts are along non-lane dims.
        xp = jnp.pad(xf, ((pad, pad), (0, 0), (0, 0)))
        v = xp[0:H]
        for d in range(1, pool_size):
            v = v + xp[d:d + H]

        vp = jnp.pad(v, ((0, 0), (pad, pad), (0, 0)))
        s = vp[:, 0:W]
        for d in range(1, pool_size):
            s = s + vp[:, d:d + W]

        # count_include_pad=False via precomputed 1/valid-count plane
        # (H, W, 1) broadcast over channels; fold the "- x" in the same expr.
        o_ref[...] = (s * inv_ref[...] - xf).astype(o_ref.dtype)

    return pooling_kernel


def pooling_forward(x: jax.Array, pool_size: int = 3) -> jax.Array:
    """x: (N, C, H, W) -> (N, C, H, W), equivalent to Pooling(pool_size)(x)."""
    if pool_size % 2 != 1:
        # PyTorch AvgPool2d with even kernel + pad=k//2 has a different output
        # geometry; PoolFormer only uses odd pool sizes.
        raise ValueError("pool_size must be odd")
    N, C, H, W = x.shape
    pad = pool_size // 2

    # Precompute reciprocal of the number of *valid* (non-pad) elements per
    # output position; shape (H, W, 1) so it broadcasts over channels.
    ri = jnp.arange(H)
    ci = jnp.arange(W)
    rcnt = jnp.minimum(ri + pad, H - 1) - jnp.maximum(ri - pad, 0) + 1
    ccnt = jnp.minimum(ci + pad, W - 1) - jnp.maximum(ci - pad, 0) + 1
    inv_cnt = (1.0 / (rcnt[:, None] * ccnt[None, :]).astype(jnp.float32))[..., None]

    # NCHW -> NHWC so channels map to lanes inside the kernel.
    x_t = jnp.transpose(x, (0, 2, 3, 1))  # (N, H, W, C)

    kernel = _make_pooling_kernel(pool_size, H, W)
    out_t = pl.pallas_call(
        kernel,
        out_shape=jax.ShapeDtypeStruct((N, H, W, C), x.dtype),
        grid=(N,),
        in_specs=[
            pl.BlockSpec((pl.Squeezed(), H, W, C), lambda n: (n, 0, 0, 0)),
            pl.BlockSpec((H, W, 1), lambda n: (0, 0, 0)),  # resident constant
        ],
        out_specs=pl.BlockSpec((pl.Squeezed(), H, W, C), lambda n: (n, 0, 0, 0)),
        compiler_params=pltpu.CompilerParams(
            dimension_semantics=("parallel",)),
    )(x_t, inv_cnt)

    # Back to the module's NCHW layout.
    return jnp.transpose(out_t, (0, 3, 1, 2))


def _reference(x: jax.Array, pool_size: int = 3) -> jax.Array:
    """Pure-JAX reference (AvgPool2d, count_include_pad=False) - x."""
    pad = pool_size // 2
    window = (1, 1, pool_size, pool_size)
    strides = (1, 1, 1, 1)
    padding = ((0, 0), (0, 0), (pad, pad), (pad, pad))
    xf = x.astype(jnp.float32)
    sums = lax.reduce_window(xf, 0.0, lax.add, window, strides, padding)
    counts = lax.reduce_window(jnp.ones_like(xf), 0.0, lax.add,
                               window, strides, padding)
    return (sums / counts - xf).astype(x.dtype)


if __name__ == "__main__":
    key = jax.random.PRNGKey(0)
    x = jax.random.normal(key, (2, 4, 16, 16), dtype=jnp.float32)

    out = pooling_forward(x, pool_size=3)
    out = jax.block_until_ready(out)

    ref = _reference(x, pool_size=3)
    if not jnp.allclose(out, ref, atol=1e-5, rtol=1e-5):
        raise AssertionError("Pallas Pooling kernel does not match reference")

    print("KERNEL_OK")
</pallas_src>

<mosaic_0001>
module attributes {stable_mosaic.version = 11 : i64} {
  func.func @pooling_kernel(%arg0: i32, %arg1: memref<1x16x16x4xf32, #tpu.memory_space<vmem>>, %arg2: memref<16x16x1xf32, #tpu.memory_space<vmem>>, %arg3: memref<1x16x16x4xf32, #tpu.memory_space<vmem>>) attributes {dimension_semantics = [#tpu.dimension_semantics<parallel>], iteration_bounds = array<i64: 2>, scalar_prefetch = 0 : i64, scratch_operands = 0 : i64, tpu.core_type = #tpu.core_type<tc>, window_params = [{transform_indices = @transform_0, window_bounds = array<i64: 1, 16, 16, 4>}, {pipeline_mode = #tpu.pipeline_mode<synchronous>, transform_indices = @transform_1, window_bounds = array<i64: 16, 16, 1>}, {transform_indices = @transform_2, window_bounds = array<i64: 1, 16, 16, 4>}]} {
    %c0 = arith.constant 0 : index
    %c0_0 = arith.constant 0 : index
    %c0_1 = arith.constant 0 : index
    %c0_2 = arith.constant 0 : index
    %0 = vector.load %arg1[%c0, %c0_0, %c0_1, %c0_2] : memref<1x16x16x4xf32, #tpu.memory_space<vmem>>, vector<1x16x16x4xf32>
    %1 = vector.shape_cast %0 : vector<1x16x16x4xf32> to vector<16x16x4xf32>
    %c0_i32 = arith.constant 0 : i32
    %2 = arith.sitofp %c0_i32 : i32 to f32
    %3 = vector.broadcast %2 : f32 to vector<1x16x4xf32>
    %4 = tpu.concatenate %3, %1 in 0 : vector<1x16x4xf32>, vector<16x16x4xf32> -> vector<17x16x4xf32>
    %5 = vector.broadcast %2 : f32 to vector<1x16x4xf32>
    %6 = tpu.concatenate %4, %5 in 0 : vector<17x16x4xf32>, vector<1x16x4xf32> -> vector<18x16x4xf32>
    %7 = vector.extract_strided_slice %6 {offsets = [0, 0, 0], sizes = [16, 16, 4], strides = [1, 1, 1]} : vector<18x16x4xf32> to vector<16x16x4xf32>
    %8 = vector.extract_strided_slice %6 {offsets = [1, 0, 0], sizes = [16, 16, 4], strides = [1, 1, 1]} : vector<18x16x4xf32> to vector<16x16x4xf32>
    %9 = arith.addf %7, %8 : vector<16x16x4xf32>
    %10 = vector.extract_strided_slice %6 {offsets = [2, 0, 0], sizes = [16, 16, 4], strides = [1, 1, 1]} : vector<18x16x4xf32> to vector<16x16x4xf32>
    %11 = arith.addf %9, %10 : vector<16x16x4xf32>
    %c0_i32_3 = arith.constant 0 : i32
    %12 = arith.sitofp %c0_i32_3 : i32 to f32
    %13 = vector.broadcast %12 : f32 to vector<16x1x4xf32>
    %14 = tpu.concatenate %13, %11 in 1 : vector<16x1x4xf32>, vector<16x16x4xf32> -> vector<16x17x4xf32>
    %15 = vector.broadcast %12 : f32 to vector<16x1x4xf32>
    %16 = tpu.concatenate %14, %15 in 1 : vector<16x17x4xf32>, vector<16x1x4xf32> -> vector<16x18x4xf32>
    %17 = vector.extract_strided_slice %16 {offsets = [0, 0, 0], sizes = [16, 16, 4], strides = [1, 1, 1]} : vector<16x18x4xf32> to vector<16x16x4xf32>
    %18 = vector.extract_strided_slice %16 {offsets = [0, 1, 0], sizes = [16, 16, 4], strides = [1, 1, 1]} : vector<16x18x4xf32> to vector<16x16x4xf32>
    %19 = arith.addf %17, %18 : vector<16x16x4xf32>
    %20 = vector.extract_strided_slice %16 {offsets = [0, 2, 0], sizes = [16, 16, 4], strides = [1, 1, 1]} : vector<16x18x4xf32> to vector<16x16x4xf32>
    %21 = arith.addf %19, %20 : vector<16x16x4xf32>
    %c0_4 = arith.constant 0 : index
    %c0_5 = arith.constant 0 : index
    %c0_6 = arith.constant 0 : index
    %22 = vector.load %arg2[%c0_4, %c0_5, %c0_6] : memref<16x16x1xf32, #tpu.memory_space<vmem>>, vector<16x16x1xf32>
    %23 = vector.broadcast %22 : vector<16x16x1xf32> to vector<16x16x4xf32>
    %24 = arith.mulf %21, %23 : vector<16x16x4xf32>
    %25 = arith.subf %24, %1 : vector<16x16x4xf32>
    %c0_7 = arith.constant 0 : index
    %c0_8 = arith.constant 0 : index
    %c0_9 = arith.constant 0 : index
    %c0_10 = arith.constant 0 : index
    %26 = vector.load %arg3[%c0_7, %c0_8, %c0_9, %c0_10] : memref<1x16x16x4xf32, #tpu.memory_space<vmem>>, vector<1x16x16x4xf32>
    %27 = vector.shape_cast %26 : vector<1x16x16x4xf32> to vector<16x16x4xf32>
    %28 = vector.shape_cast %25 : vector<16x16x4xf32> to vector<1x16x16x4xf32>
    tpu.vector_store %arg3[%c0_7, %c0_8, %c0_9, %c0_10], %28 {strides = array<i32>} : memref<1x16x16x4xf32, #tpu.memory_space<vmem>>, vector<1x16x16x4xf32>,
    return
  }
  func.func @transform_0(%arg0: i32) -> (i32, i32, i32, i32) {
    %c0_i32 = arith.constant 0 : i32
    %c0_i32_0 = arith.constant 0 : i32
    %c0_i32_1 = arith.constant 0 : i32
    %c0_i32_2 = arith.constant 0 : i32
    return %arg0, %c0_i32, %c0_i32_0, %c0_i32_1 : i32, i32, i32, i32
  }
  func.func @transform_1(%arg0: i32) -> (i32, i32, i32) {
    %c0_i32 = arith.constant 0 : i32
    %c0_i32_0 = arith.constant 0 : i32
    %c0_i32_1 = arith.constant 0 : i32
    %c0_i32_2 = arith.constant 0 : i32
    return %c0_i32, %c0_i32_0, %c0_i32_1 : i32, i32, i32
  }
  func.func @transform_2(%arg0: i32) -> (i32, i32, i32, i32) {
    %c0_i32 = arith.constant 0 : i32
    %c0_i32_0 = arith.constant 0 : i32
    %c0_i32_1 = arith.constant 0 : i32
    %c0_i32_2 = arith.constant 0 : i32
    return %arg0, %c0_i32, %c0_i32_0, %c0_i32_1 : i32, i32, i32, i32
  }
}

</mosaic_0001>

<bundles_post_ra>
// kernel: tpu_custom_call.1
= control target key start
LH: loop header
LB: loop body
LE: loop exit
PB: predicated region body
PF: predicated region fallthrough
CT: control target
= control target key end

     0   :  { %s1116_s9 = smov 0   ;;  %s1882_s0 = inlined_call_operand.vmem [shape: f32[2,16,16,4], index: 0, kind: input, shape index: {}]   ;;  %s1883_s1 = inlined_call_operand.vmem [shape: f32[16,16,1], index: 1, kind: input, shape index: {}]   ;;  %s1884_s2 = inlined_call_operand.vmem [shape: f32[2,16,16,4], index: 2, kind: output, shape index: {}]  }
   0x1 LB: > { %s1067_s10 = sadd.s32 4294967295, %s1098_s9   ;;  %p1071_p0 = scmp.ge.s32.totalorder %s1098_s9, 1  ;;  %s1098_s9 = sphi %s1116_s9, %s12_s9  }
   0x2   : > { %p112_p1 = scmp.lt.s32.totalorder %s1098_s9, 3 }
   0x4   : > { %p113_p2 = pnand %p1071_p0, %p112_p1 }
   0x6   : > { %116 = sbr.rel (%p113_p2) target bundleno = 215 (0xd7), region = 28 }
   0xb   : > { %v727_v0 = vld [vmem:[%s1883_s1 + $0x20] sm:$0xff]  ;;  %v725_v1 = vld [vmem:[%s1883_s1 + $0x10] sm:$0xff]  ;;  %v1100_v3 = vmov 0   ;;  %v728_v4 = vld [vmem:[%s1883_s1 + $0x28] sm:$0xff]  ;;  %p134_p3 = scmp.lt.s32.totalorder %s1067_s10, 1  ;;  %vm272_vm0 = vcmask 1040384  }
   0xc   : > { %v723_v2 = vld [vmem:[%s1883_s1] sm:$0xff]  ;;  %1091 = vset.pattern.permute.xlu2 %v1100_v3  ;;  %1090 = vset.pattern.permute.xlu1 %v1100_v3  ;;  %v726_v5 = vld [vmem:[%s1883_s1 + $0x18] sm:$0xff]  ;;  %v724_v6 = vld [vmem:[%s1883_s1 + $0x8] sm:$0xff]  ;;  %vm433_vm1 = vcmask 1046528   ;;  %vm578_vm2 = vcmask 1045504   ;;  %vm979_vm3 = vcmask 31744  }
   0xd   : > { %1089 = vset.pattern.permute.xlu0 %v1100_v3  ;;  %777 = vperm.xlu2 %1091, %v727_v0   ;;  %v731_v7 = vld [vmem:[%s1883_s1 + $0x40] sm:$0xff]  ;;  %v730_v8 = vld [vmem:[%s1883_s1 + $0x38] sm:$0xff]  ;;  %v729_v9 = vld [vmem:[%s1883_s1 + $0x30] sm:$0xff]  ;;  %s1928_s10 = smov (!%p134_p3, %s1067_s10), 1 }
   0xe   : > { %767 = vperm.xlu1 %1090, %v725_v1   ;;  %757 = vperm.xlu0 %1089, %v723_v2   ;;  %v734_v10 = vld [vmem:[%s1883_s1 + $0x58] sm:$0xff]  ;;  %v733_v11 = vld [vmem:[%s1883_s1 + $0x50] sm:$0xff]  ;;  %v732_v12 = vld [vmem:[%s1883_s1 + $0x48] sm:$0xff]  ;;  %s1078_s27 = sshll.u32 %s1928_s10, 8 }
   0xf   : > { %v737_v13 = vld [vmem:[%s1883_s1 + $0x70] sm:$0xff]  ;;  %v736_v14 = vld [vmem:[%s1883_s1 + $0x68] sm:$0xff]  ;;  %v735_v15 = vld [vmem:[%s1883_s1 + $0x60] sm:$0xff]  ;;  %s1208_s8 = scalar_lea.vmem %s1882_s0, %s1078_s27  ;;  %s1404_s30 = scalar_lea.vmem %s1884_s2, %s1078_s27 }
  0x10   : > { %v740_v16 = vld [vmem:[%s1883_s1 + $0x88] sm:$0xff]  ;;  %v739_v17 = vld [vmem:[%s1883_s1 + $0x80] sm:$0xff]  ;;  %v738_v18 = vld [vmem:[%s1883_s1 + $0x78] sm:$0xff] }
  0x11   : > { %v743_v19 = vld [vmem:[%s1883_s1 + $0xa0] sm:$0xff]  ;;  %v742_v20 = vld [vmem:[%s1883_s1 + $0x98] sm:$0xff]  ;;  %v741_v21 = vld [vmem:[%s1883_s1 + $0x90] sm:$0xff] }
  0x12   : > { %v746_v22 = vld [vmem:[%s1883_s1 + $0xb8] sm:$0xff]  ;;  %v745_v23 = vld [vmem:[%s1883_s1 + $0xb0] sm:$0xff]  ;;  %v744_v24 = vld [vmem:[%s1883_s1 + $0xa8] sm:$0xff] }
  0x13   : > { %v1211_v25 = vld [vmem:[%s1208_s8 + $0x10] sm:$0xff]  ;;  %v1214_v26 = vld [vmem:[%s1208_s8 + $0x20] sm:$0xff]  ;;  %v1217_v27 = vld [vmem:[%s1208_s8 + $0x18] sm:$0xff] }
  0x14   : > { %v1220_v28 = vld [vmem:[%s1208_s8 + $0x28] sm:$0xff]  ;;  %v180_v29 = vadd.f32 %v1214_v26, %v1211_v25  ;;  %v749_v31 = vld [vmem:[%s1883_s1 + $0xd0] sm:$0xff]  ;;  %v747_v33 = vld [vmem:[%s1883_s1 + $0xc0] sm:$0xff] }
  0x15   : > { %782 = vperm.xlu2 %1091, %v728_v4   ;;  %v181_v30 = vadd.f32 %v1220_v28, %v1217_v27  ;;  %v748_v32 = vld [vmem:[%s1883_s1 + $0xc8] sm:$0xff]  ;;  %v1236_v34 = vld [vmem:[%s1208_s8 + $0x30] sm:$0xff]  ;;  %v1239_v35 = vld [vmem:[%s1208_s8 + $0x38] sm:$0xff] }
  0x16   : > { %772 = vperm.xlu1 %1090, %v726_v5   ;;  %762 = vperm.xlu0 %1089, %v724_v6   ;;  %v212_v36 = vadd.f32 %v180_v29, %v1236_v34  ;;  %v752_v40 = vld [vmem:[%s1883_s1 + $0xe8] sm:$0xff]  ;;  %v1247_v41 = vld [vmem:[%s1208_s8] sm:$0xff]  ;;  %v750_v44 = vld [vmem:[%s1883_s1 + $0xd8] sm:$0xff] }
  0x17   : > { %v213_v37 = vadd.f32 %v181_v30, %v1239_v35  ;;  %v1250_v42 = vld [vmem:[%s1208_s8 + $0x8] sm:$0xff]  ;;  %v751_v43 = vld [vmem:[%s1883_s1 + $0xe0] sm:$0xff]  ;;  %v178_v45 = vadd.f32 %v1211_v25, %v1247_v41  ;;  %v1279_v56 = vld [vmem:[%s1208_s8 + $0x50] sm:$0xff] }
  0x18   : > { %v279_v38 = vrot.slane %v212_v36, 7  ;;  %v1262_v46 = vadd.f32 %v1217_v27, %v1250_v42  ;;  %v1273_v54 = vld [vmem:[%s1208_s8 + $0x40] sm:$0xff]  ;;  %v1276_v55 = vld [vmem:[%s1208_s8 + $0x48] sm:$0xff]  ;;  %v1282_v57 = vld [vmem:[%s1208_s8 + $0x58] sm:$0xff]  ;;  %v182_v36 = vadd.f32 %v1236_v34, %v1214_v26 }
  0x19   : > { %v280_v39 = vrot.slane %v213_v37, 7  ;;  %v210_v49 = vadd.f32 %v178_v45, %v1214_v26  ;;  %v184_v58 = vadd.f32 %v1273_v54, %v1236_v34  ;;  %v185_v59 = vadd.f32 %v1276_v55, %v1239_v35  ;;  %v754_v2 = vld [vmem:[%s1883_s1 + $0xf8] sm:$0xff]  ;;  %v753_v3 = vld [vmem:[%s1883_s1 + $0xf0] sm:$0xff] }
  0x1a   : > { %v371_v48 = vsel %vm272_vm0, 0.0, %v279_v38  ;;  %v1269_v50 = vadd.f32 %v1262_v46, %v1220_v28  ;;  %v186_v63 = vadd.f32 %v1279_v56, %v1273_v54  ;;  %v187_v6 = vadd.f32 %v1282_v57, %v1276_v55 }
  0x1b   : > { %v281_v47 = vsel %vm272_vm0, %v279_v38, %v280_v39  ;;  %v387_v51 = vsel %vm272_vm0, %v280_v39, 0.0  ;;  %v444_v52 = vrot.slane %v371_v48, 1  ;;  %v276_v60 = vrot.slane %v210_v49, 7  ;;  %v1339_v39 = vld [vmem:[%s1208_s8 + $0x70] sm:$0xff] }
  0x1c   : > { %v445_v53 = vrot.slane %v281_v47, 1  ;;  %v277_v61 = vrot.slane %v1269_v50, 7  ;;  %v447_v62 = vrot.slane %v387_v51, 1  ;;  %v589_v0 = vrot.slane %v371_v48, 2 }
  0x1d   : > { %797 = vperm.xlu2 %1091, %v731_v7   ;;  %v590_v1 = vrot.slane %v281_v47, 2  ;;  %v216_v5 = vadd.f32 %v184_v58, %v1279_v56  ;;  %v273_v7 = vrot.slane %v178_v45, 7 }
  0x1e   : > { %792 = vperm.xlu1 %1090, %v730_v8   ;;  %787 = vperm.xlu0 %1089, %v729_v9   ;;  %v446_v4 = vsel %vm433_vm1, %v444_v52, %v445_v53  ;;  %v1302_v8 = vadd.f32 %v185_v59, %v1282_v57  ;;  %v1305_v9 = vld [vmem:[%s1208_s8 + $0x60] sm:$0xff] }
  0x1f   : > { %1902 = vst [vmem:[#allocation2_spill] sm:$0xff] %v1305_v9  ;;  %v1330_v29 = vsel %vm272_vm0, 0.0, %v273_v7  ;;  %v591_v30 = vsel %vm578_vm2, %v589_v0, %v590_v1  ;;  %v190_v58 = vadd.f32 %v1339_v39, %v1305_v9 }
  0x20   : > { %v434_v45 = vrot.slane %v1330_v29, 1 }
  0x25   : > { %812 = vperm.xlu2 %1091, %v734_v10   ;;  %v1308_v10 = vld [vmem:[%s1208_s8 + $0x68] sm:$0xff] }
  0x26   : > { %807 = vperm.xlu1 %1090, %v733_v11   ;;  %802 = vperm.xlu0 %1089, %v732_v12   ;;  %v1313_v11 = vsel %vm272_vm0, %v276_v60, %v277_v61  ;;  %v370_v12 = vsel %vm272_vm0, 0.0, %v276_v60  ;;  %v1366_v60 = vadd.f32 %v182_v36, %v1273_v54 }
  0x27   : > { %v584_v37 = vrot.slane %v370_v12, 2  ;;  %v585_v38 = vrot.slane %v1313_v11, 2 }
  0x28   : > { %v282_v50 = vrot.slane %v1366_v60, 7 }
  0x29   : > { %v586_v0 = vsel %vm578_vm2, %v584_v37, %v585_v38  ;;  %v1397_v37 = vld [vmem:[%s1208_s8 + $0x90] sm:$0xff] }
  0x2a   : > { %1903 = vst [vmem:[#allocation3_spill] sm:$0xff] %v1397_v37 }
  0x2d   : > { %827 = vperm.xlu2 %1091, %v737_v13   ;;  %v274_v13 = vrot.slane %v1262_v46, 7 }
  0x2e   : > { %822 = vperm.xlu1 %1090, %v736_v14   ;;  %817 = vperm.xlu0 %1089, %v735_v15   ;;  %v448_v14 = vsel %vm433_vm1, %v445_v53, %v447_v62  ;;  %v592_v15 = vrot.slane %v387_v51, 2 }
  0x35   : > { %842 = vperm.xlu2 %1091, %v740_v16   ;;  %v1319_v16 = vadd.f32 %v186_v63, %v1305_v9 }
  0x36   : > { %837 = vperm.xlu1 %1090, %v739_v17   ;;  %832 = vperm.xlu0 %1089, %v738_v18   ;;  %v219_v17 = vadd.f32 %v187_v6, %v1308_v10  ;;  %v550_v18 = vadd.f32 %v446_v4, %v371_v48 }
  0x38   : > { %v695_v48 = vadd.f32 %v591_v30, %v550_v18 }
  0x3d   : > { %857 = vperm.xlu2 %1091, %v743_v19   ;;  %v285_v19 = vrot.slane %v216_v5, 7 }
  0x3e   : > { %852 = vperm.xlu1 %1090, %v742_v20   ;;  %847 = vperm.xlu0 %1089, %v741_v21   ;;  %v439_v20 = vrot.slane %v370_v12, 1  ;;  %v440_v21 = vrot.slane %v1313_v11, 1 }
  0x45   : > { %872 = vperm.xlu2 %1091, %v746_v22   ;;  %v551_v22 = vadd.f32 %v448_v14, %v281_v47 }
  0x46   : > { %867 = vperm.xlu1 %1090, %v745_v23   ;;  %862 = vperm.xlu0 %1089, %v744_v24   ;;  %v1891_v23 = vrot.slane %v1302_v8, 7  ;;  %v1327_v24 = vsel %vm272_vm0, %v273_v7, %v274_v13 }
  0x47   : > { %v435_v47 = vrot.slane %v1327_v24, 1  ;;  %v1893_v36 = vrot.slane %v1327_v24, 2 }
  0x48   : > { %v1353_v51 = vsel %vm272_vm0, %v285_v19, %v1891_v23 }
  0x49   : > { %v1886_v4 = vrot.slane %v1353_v51, 1  ;;  %v1885_v6 = vrot.slane %v1353_v51, 2  ;;  %v436_v7 = vsel %vm433_vm1, %v434_v45, %v435_v47 }
  0x4d   : > { %887 = vperm.xlu2 %1091, %v749_v31   ;;  %v593_v31 = vsel %vm578_vm2, %v590_v1, %v592_v15  ;;  %v1372_v1 = vld [vmem:[%s1208_s8 + $0x80] sm:$0xff] }
  0x4e   : > { %882 = vperm.xlu1 %1090, %v748_v32   ;;  %877 = vperm.xlu0 %1089, %v747_v33   ;;  %v1892_v32 = vrot.slane %v1319_v16, 7  ;;  %v289_v33 = vrot.slane %v219_v17, 7  ;;  %v696_v49 = vadd.f32 %v593_v31, %v551_v22  ;;  %v579_v17 = vrot.slane %v1330_v29, 2 }
  0x4f   : > { %v192_v18 = vadd.f32 %v1372_v1, %v1339_v39  ;;  %v386_v22 = vsel %vm272_vm0, %v277_v61, 0.0 }
  0x50   : > { %v1358_v52 = vsel %vm272_vm0, %v1892_v32, %v289_v33  ;;  %v390_v53 = vsel %vm272_vm0, %v289_v33, 0.0 }
  0x51   : > { %v1890_v14 = vrot.slane %v1358_v52, 1  ;;  %v462_v15 = vrot.slane %v390_v53, 1  ;;  %v1888_v31 = vrot.slane %v1358_v52, 2  ;;  %v607_v33 = vrot.slane %v390_v53, 2 }
  0x52   : > { %v188_v53 = vadd.f32 %v1305_v9, %v1279_v56 }
  0x53   : > { %v463_v45 = vsel %vm433_vm1, %v1890_v14, %v462_v15 }
  0x54   : > { %v557_v15 = vadd.f32 %v463_v45, %v1358_v52 }
  0x55   : > { %902 = vperm.xlu2 %1091, %v752_v40   ;;  %v1342_v40 = vld [vmem:[%s1208_s8 + $0x78] sm:$0xff] }
  0x56   : > { %897 = vperm.xlu1 %1090, %v751_v43   ;;  %892 = vperm.xlu0 %1089, %v750_v44   ;;  %v373_v43 = vsel %vm272_vm0, 0.0, %v285_v19  ;;  %v441_v44 = vsel %vm433_vm1, %v439_v20, %v440_v21  ;;  %v191_v59 = vadd.f32 %v1342_v40, %v1308_v10  ;;  %v222_v19 = vadd.f32 %v190_v58, %v1372_v1 }
  0x57   : > { %v454_v62 = vrot.slane %v373_v43, 1  ;;  %v548_v63 = vadd.f32 %v441_v44, %v370_v12  ;;  %v599_v5 = vrot.slane %v373_v43, 2  ;;  %v442_v58 = vrot.slane %v386_v22, 1 }
  0x58   : > { %v294_v60 = vrot.slane %v222_v19, 7  ;;  %v587_v19 = vrot.slane %v386_v22, 2 }
  0x59   : > { %v601_v61 = vsel %vm578_vm2, %v599_v5, %v1885_v6  ;;  %v1413_v44 = vadd.f32 %v586_v0, %v548_v63  ;;  %v1430_v0 = vadd.f32 %v192_v18, %v1397_v37  ;;  %v581_v5 = vsel %vm578_vm2, %v579_v17, %v1893_v36 }
  0x5a   : > { %v385_v18 = vsel %vm272_vm0, %v274_v13, 0.0  ;;  %v1452_v17 = vadd.f32 %v188_v53, %v1339_v39  ;;  %v443_v22 = vsel %vm433_vm1, %v440_v21, %v442_v58  ;;  %v376_v45 = vsel %vm272_vm0, 0.0, %v294_v60 }
  0x5e   : > { %912 = vperm.xlu1 %1090, %v754_v2   ;;  %907 = vperm.xlu0 %1089, %v753_v3   ;;  %v1375_v2 = vld [vmem:[%s1208_s8 + $0x88] sm:$0xff] }
  0x5f   : > { %v1388_v20 = vadd.f32 %v191_v59, %v1375_v2  ;;  %v1424_v59 = vld [vmem:[%s1208_s8 + $0x98] sm:$0xff]  ;;  %v193_v63 = vadd.f32 %v1375_v2, %v1342_v40 }
  0x67   : > { %v778_v3 = vpop.permute.xlu2 %777 }
  0x68   : > { %v919_v12 = vmul.f32 %v778_v3, %v695_v48  ;;  %v546_v48 = vadd.f32 %v436_v7, %v1330_v29  ;;  %v608_v29 = vsel %vm578_vm2, %v1888_v31, %v607_v33  ;;  %v183_v7 = vadd.f32 %v1239_v35, %v1220_v28  ;;  %v1449_v33 = vld [vmem:[%s1208_s8 + $0xa8] sm:$0xff]  ;;  %v1473_v31 = vld [vmem:[%s1208_s8 + $0xb0] sm:$0xff] }
  0x69   : > { %v197_v21 = vadd.f32 %v1449_v33, %v1424_v59 }
  0x6a   : > { %v951_v30 = vsub.f32 %v919_v12, %v1214_v26  ;;  %v456_v26 = vsel %vm433_vm1, %v454_v62, %v1886_v4  ;;  %v1887_v62 = vrot.slane %v1388_v20, 7  ;;  %v215_v46 = vadd.f32 %v183_v7, %v1276_v55 }
  0x6b   : > { %v554_v3 = vadd.f32 %v456_v26, %v373_v43  ;;  %v225_v43 = vadd.f32 %v193_v63, %v1424_v59  ;;  %v702_v7 = vadd.f32 %v608_v29, %v557_v15  ;;  %v1470_v4 = vadd.f32 %v581_v5, %v546_v48 }
  0x6c   : > { %984 = vst.msk [vmem:[%s1404_s30 + $0x20] sm:$0xff] %vm979_vm3, %v951_v30  ;;  %v1446_v30 = vld [vmem:[%s1208_s8 + $0xa0] sm:$0xff]  ;;  %v1461_v13 = vsel %vm272_vm0, %v294_v60, %v1887_v62  ;;  %v437_v62 = vrot.slane %v385_v18, 1  ;;  %v1476_v60 = vld [vmem:[%s1208_s8 + $0xb8] sm:$0xff]  ;;  %v372_v29 = vsel %vm272_vm0, 0.0, %v282_v50 }
  0x6d   : > { %v298_v63 = vrot.slane %v225_v43, 7  ;;  %v196_v6 = vadd.f32 %v1446_v30, %v1397_v37  ;;  %v699_v58 = vadd.f32 %v601_v61, %v554_v3  ;;  %v469_v43 = vrot.slane %v376_v45, 1 }
  0x6e   : > { %v449_v32 = vrot.slane %v372_v29, 1 }
  0x6f   : > { %v783_v12 = vpop.permute.xlu2 %782  ;;  %v393_v3 = vsel %vm272_vm0, %v298_v63, 0.0 }
  0x70   : > { %v920_v26 = vmul.f32 %v783_v12, %v696_v49  ;;  %v1889_v49 = vrot.slane %v1430_v0, 7  ;;  %v283_v12 = vrot.slane %v215_v46, 7  ;;  %v588_v46 = vsel %vm578_vm2, %v585_v38, %v587_v19 }
  0x71   : > { %v614_v19 = vrot.slane %v376_v45, 2 }
  0x72   : > { %v952_v53 = vsub.f32 %v920_v26, %v1220_v28  ;;  %v1895_v28 = vrot.slane %v1461_v13, 1  ;;  %v549_v26 = vadd.f32 %v443_v22, %v1313_v11  ;;  %v1489_v48 = vsel %vm272_vm0, %v1889_v49, %v298_v63 }
  0x73   : > { %v284_v5 = vsel %vm272_vm0, %v282_v50, %v283_v12  ;;  %v388_v15 = vsel %vm272_vm0, %v283_v12, 0.0  ;;  %v228_v22 = vadd.f32 %v196_v6, %v1473_v31  ;;  %v1497_v11 = vadd.f32 %v197_v21, %v1476_v60 }
  0x74   : > { %985 = vst.msk [vmem:[%s1404_s30 + $0x28] sm:$0xff] %vm979_vm3, %v952_v53  ;;  %v438_v49 = vsel %vm433_vm1, %v435_v47, %v437_v62  ;;  %v582_v63 = vrot.slane %v385_v18, 2  ;;  %v471_v50 = vsel %vm433_vm1, %v469_v43, %v1895_v28  ;;  %v1897_v6 = vrot.slane %v1489_v48, 1 }
  0x75   : > { %v477_v12 = vrot.slane %v393_v3, 1  ;;  %v450_v14 = vrot.slane %v284_v5, 1  ;;  %v452_v23 = vrot.slane %v388_v15, 1  ;;  %v622_v53 = vrot.slane %v393_v3, 2 }
  0x76   : > { %v303_v9 = vrot.slane %v228_v22, 7  ;;  %v1896_v47 = vrot.slane %v1497_v11, 7  ;;  %v560_v62 = vadd.f32 %v471_v50, %v376_v45  ;;  %v1904_v18 = vrot.slane %v1461_v13, 2 }
  0x77   : > { %v798_v38 = vpop.permute.xlu2 %797  ;;  %v1513_v43 = vadd.f32 %v588_v46, %v549_v26  ;;  %v1905_v28 = vrot.slane %v1327_v24, 2  ;;  %v595_v45 = vrot.slane %v284_v5, 2  ;;  %v453_v3 = vsel %vm433_vm1, %v450_v14, %v452_v23 }
  0x78   : > { %v923_v61 = vmul.f32 %v798_v38, %v699_v58  ;;  %v616_v58 = vsel %vm578_vm2, %v614_v19, %v1904_v18  ;;  %v547_v38 = vadd.f32 %v438_v49, %v1327_v24  ;;  %v451_v26 = vsel %vm433_vm1, %v449_v32, %v450_v14 }
  0x79   : > { %v583_v21 = vsel %vm578_vm2, %v1905_v28, %v582_v63  ;;  %v594_v46 = vrot.slane %v372_v29, 2  ;;  %v1906_v49 = vrot.slane %v1319_v16, 7  ;;  %v1907_v24 = vrot.slane %v1489_v48, 2  ;;  %v1551_v63 = vld [vmem:[%s1208_s8 + $0xc0] sm:$0xff] }
  0x7a   : > { %v955_v36 = vsub.f32 %v923_v61, %v1273_v54  ;;  %v478_v54 = vsel %vm433_vm1, %v1897_v6, %v477_v12  ;;  %v597_v61 = vrot.slane %v388_v15, 2  ;;  %v198_v22 = vadd.f32 %v1473_v31, %v1446_v30 }
  0x7b   : > { %v623_v28 = vsel %vm578_vm2, %v1907_v24, %v622_v53  ;;  %v1539_v23 = vsel %vm272_vm0, %v303_v9, %v1896_v47  ;;  %v1908_v32 = vrot.slane %v1302_v8, 7  ;;  %v563_v15 = vadd.f32 %v478_v54, %v1489_v48  ;;  %v1557_v47 = vld [vmem:[%s1208_s8 + $0xc8] sm:$0xff] }
  0x7c   : > { %988 = vst.msk [vmem:[%s1404_s30 + $0x40] sm:$0xff] %vm979_vm3, %v955_v36  ;;  %v1529_v36 = vsel %vm272_vm0, 0.0, %v1906_v49  ;;  %v194_v19 = vadd.f32 %v1397_v37, %v1372_v1  ;;  %v379_v53 = vsel %vm272_vm0, 0.0, %v303_v9  ;;  %v199_v50 = vadd.f32 %v1476_v60, %v1449_v33 }
  0x7d   : > { %v1544_v16 = vsel %vm272_vm0, %v1908_v32, 0.0  ;;  %v553_v8 = vadd.f32 %v453_v3, %v284_v5  ;;  %v598_v24 = vsel %vm578_vm2, %v595_v45, %v597_v61  ;;  %v552_v32 = vadd.f32 %v451_v26, %v372_v29 }
  0x7e   : > { %v596_v9 = vsel %vm578_vm2, %v594_v46, %v595_v45  ;;  %v485_v37 = vrot.slane %v1539_v23, 1  ;;  %v459_v5 = vrot.slane %v1529_v36, 1  ;;  %v1566_v61 = vadd.f32 %v198_v22, %v1551_v63 }
  0x7f   : > { %v813_v14 = vpop.permute.xlu2 %812  ;;  %v189_v45 = vadd.f32 %v1308_v10, %v1282_v57  ;;  %v705_v3 = vadd.f32 %v616_v58, %v560_v62  ;;  %v692_v26 = vadd.f32 %v583_v21, %v547_v38  ;;  %v708_v46 = vadd.f32 %v623_v28, %v563_v15 }
  0x80   : > { %v926_v12 = vmul.f32 %v813_v14, %v702_v7  ;;  %v768_v18 = vpop.permute.xlu1 %767  ;;  %v758_v49 = vpop.permute.xlu0 %757  ;;  %v484_v14 = vrot.slane %v379_v53, 1  ;;  %v698_v22 = vadd.f32 %v598_v24, %v553_v8  ;;  %v604_v62 = vrot.slane %v1529_v36, 2 }
  0x81   : > { %v917_v54 = vmul.f32 %v768_v18, %v1413_v44  ;;  %v915_v6 = vmul.f32 %v758_v49, %v1470_v4  ;;  %v231_v44 = vadd.f32 %v199_v50, %v1557_v47  ;;  %v1900_v18 = vrot.slane %v1539_v23, 2  ;;  %v1586_v50 = vld [vmem:[%s1208_s8 + $0xd8] sm:$0xff] }
  0x82   : > { %v958_v7 = vsub.f32 %v926_v12, %v1282_v57  ;;  %v1576_v12 = vadd.f32 %v194_v19, %v1446_v30  ;;  %v697_v57 = vadd.f32 %v596_v9, %v552_v32  ;;  %v486_v21 = vsel %vm433_vm1, %v484_v14, %v485_v37 }
  0x83   : > { %v949_v29 = vsub.f32 %v917_v54, %v1211_v25  ;;  %v947_v4 = vsub.f32 %v915_v6, %v1247_v41  ;;  %v629_v25 = vrot.slane %v379_v53, 2  ;;  %v221_v41 = vadd.f32 %v189_v45, %v1342_v40  ;;  %v1583_v6 = vld [vmem:[%s1208_s8 + $0xd0] sm:$0xff]  ;;  %v1612_v45 = vld [vmem:[%s1208_s8 + $0xe8] sm:$0xff] }
  0x84   : > { %991 = vst.msk [vmem:[%s1404_s30 + $0x58] sm:$0xff] %vm979_vm3, %v958_v7  ;;  %v457_v58 = vrot.slane %v1544_v16, 1  ;;  %v1909_v28 = vrot.slane %v1358_v52, 1  ;;  %v602_v19 = vrot.slane %v1544_v16, 2  ;;  %v306_v49 = vrot.slane %v1566_v61, 7 }
  0x85   : > { %982 = vst.msk [vmem:[%s1404_s30 + $0x10] sm:$0xff] %vm979_vm3, %v949_v29  ;;  %v307_v8 = vrot.slane %v231_v44, 7  ;;  %v292_v9 = vrot.slane %v221_v41, 7  ;;  %v202_v7 = vadd.f32 %v1583_v6, %v1551_v63  ;;  %v203_v14 = vadd.f32 %v1586_v50, %v1557_v47  ;;  %v1609_v44 = vld [vmem:[%s1208_s8 + $0xe0] sm:$0xff] }
  0x86   : > { %980 = vst.msk [vmem:[%s1404_s30] sm:$0xff] %vm979_vm3, %v947_v4  ;;  %v461_v15 = vsel %vm433_vm1, %v459_v5, %v1909_v28  ;;  %v566_v5 = vadd.f32 %v486_v21, %v379_v53  ;;  %v631_v16 = vsel %vm578_vm2, %v629_v25, %v1900_v18 }
  0x87   : > { %v828_v38 = vpop.permute.xlu2 %827  ;;  %v556_v41 = vadd.f32 %v461_v15, %v1529_v36  ;;  %v1627_v21 = vsel %vm272_vm0, %v306_v49, %v307_v8  ;;  %v300_v15 = vrot.slane %v1576_v12, 7 }
  0x88   : > { %v929_v24 = vmul.f32 %v828_v38, %v705_v3  ;;  %v773_v32 = vpop.permute.xlu1 %772  ;;  %v763_v54 = vpop.permute.xlu0 %762  ;;  %v1910_v38 = vrot.slane %v1358_v52, 2  ;;  %v1912_v52 = vrot.slane %v1452_v17, 7  ;;  %v711_v17 = vadd.f32 %v631_v16, %v566_v5 }
  0x89   : > { %v918_v29 = vmul.f32 %v773_v32, %v1513_v43  ;;  %v916_v4 = vmul.f32 %v763_v54, %v692_v26  ;;  %v1911_v43 = vrot.slane %v1353_v51, 1  ;;  %v391_v54 = vsel %vm272_vm0, %v292_v9, 0.0 }
  0x8a   : > { %v961_v3 = vsub.f32 %v929_v24, %v1339_v39  ;;  %v606_v28 = vsel %vm578_vm2, %v604_v62, %v1910_v38  ;;  %v396_v39 = vsel %vm272_vm0, %v307_v8, 0.0  ;;  %v1635_v36 = vsel %vm272_vm0, %v1912_v52, %v292_v9 }
  0x8b   : > { %v458_v53 = vsel %vm433_vm1, %v1911_v43, %v457_v58  ;;  %v950_v26 = vsub.f32 %v918_v29, %v1217_v27  ;;  %v948_v25 = vsub.f32 %v916_v4, %v1250_v42  ;;  %v1913_v62 = vmov %v1912_v52 }
  0x8c   : > { %994 = vst.msk [vmem:[%s1404_s30 + $0x70] sm:$0xff] %vm979_vm3, %v961_v3  ;;  %v375_v27 = vsel %vm272_vm0, 0.0, %v1913_v62  ;;  %v234_v42 = vadd.f32 %v202_v7, %v1609_v44  ;;  %v1642_v58 = vadd.f32 %v203_v14, %v1612_v45  ;;  %v555_v8 = vadd.f32 %v458_v53, %v1353_v51 }
  0x8d   : > { %983 = vst.msk [vmem:[%s1404_s30 + $0x18] sm:$0xff] %vm979_vm3, %v950_v26  ;;  %v1914_v24 = vrot.slane %v1353_v51, 2  ;;  %v701_v29 = vadd.f32 %v606_v28, %v556_v41  ;;  %v490_v7 = vrot.slane %v1627_v21, 1  ;;  %v492_v14 = vrot.slane %v396_v39, 1 }
  0x8e   : > { %981 = vst.msk [vmem:[%s1404_s30 + $0x8] sm:$0xff] %vm979_vm3, %v948_v25  ;;  %v1901_v3 = vrot.slane %v1627_v21, 2  ;;  %v637_v38 = vrot.slane %v396_v39, 2  ;;  %v465_v43 = vrot.slane %v1635_v36, 1  ;;  %v464_v53 = vrot.slane %v375_v27, 1 }
  0x8f   : > { %v603_v32 = vsel %vm578_vm2, %v1914_v24, %v602_v19  ;;  %v843_v4 = vpop.permute.xlu2 %842  ;;  %v467_v19 = vrot.slane %v391_v54, 1  ;;  %v312_v9 = vrot.slane %v234_v42, 7  ;;  %v1899_v5 = vrot.slane %v1642_v58, 7 }
  0x90   : > { %v932_v26 = vmul.f32 %v843_v4, %v708_v46  ;;  %v793_v51 = vpop.permute.xlu1 %792  ;;  %v788_v52 = vpop.permute.xlu0 %787  ;;  %v610_v28 = vrot.slane %v1635_v36, 2  ;;  %v609_v25 = vrot.slane %v375_v27, 2  ;;  %v700_v62 = vadd.f32 %v603_v32, %v555_v8 }
  0x91   : > { %v922_v16 = vmul.f32 %v793_v51, %v698_v22  ;;  %v921_v41 = vmul.f32 %v788_v52, %v697_v57  ;;  %v493_v46 = vsel %vm433_vm1, %v490_v7, %v492_v14  ;;  %v204_v24 = vadd.f32 %v1609_v44, %v1583_v6  ;;  %v1669_v51 = vld [vmem:[%s1208_s8 + $0xf0] sm:$0xff]  ;;  %v1672_v52 = vld [vmem:[%s1208_s8 + $0xf8] sm:$0xff] }
  0x92   : > { %v964_v39 = vsub.f32 %v932_v26, %v1375_v2  ;;  %v612_v57 = vrot.slane %v391_v54, 2  ;;  %v466_v4 = vsel %vm433_vm1, %v464_v53, %v465_v43  ;;  %v468_v8 = vsel %vm433_vm1, %v465_v43, %v467_v19 }
  0x93   : > { %v954_v42 = vsub.f32 %v922_v16, %v1239_v35  ;;  %v953_v22 = vsub.f32 %v921_v41, %v1236_v34  ;;  %v1680_v32 = vsel %vm272_vm0, %v312_v9, %v1899_v5  ;;  %v382_v35 = vsel %vm272_vm0, 0.0, %v312_v9 }
  0x94   : > { %997 = vst.msk [vmem:[%s1404_s30 + $0x88] sm:$0xff] %vm979_vm3, %v964_v39  ;;  %v205_v34 = vadd.f32 %v1612_v45, %v1586_v50  ;;  %v569_v54 = vadd.f32 %v493_v46, %v1627_v21  ;;  %v638_v14 = vsel %vm578_vm2, %v1901_v3, %v637_v38  ;;  %v611_v43 = vsel %vm578_vm2, %v609_v25, %v610_v28 }
  0x95   : > { %987 = vst.msk [vmem:[%s1404_s30 + $0x38] sm:$0xff] %vm979_vm3, %v954_v42  ;;  %v1915_v53 = vrot.slane %v1430_v0, 7  ;;  %v1916_v19 = vrot.slane %v1388_v20, 7  ;;  %v1701_v16 = vadd.f32 %v204_v24, %v1669_v51  ;;  %v195_v38 = vadd.f32 %v1424_v59, %v1375_v2 }
  0x96   : > { %986 = vst.msk [vmem:[%s1404_s30 + $0x30] sm:$0xff] %vm979_vm3, %v953_v22  ;;  %v237_v41 = vadd.f32 %v205_v34, %v1672_v52  ;;  %v559_v25 = vadd.f32 %v468_v8, %v1635_v36  ;;  %v558_v0 = vadd.f32 %v466_v4, %v375_v27  ;;  %v499_v46 = vrot.slane %v382_v35, 1 }
  0x97   : > { %v377_v26 = vsel %vm272_vm0, 0.0, %v1915_v53  ;;  %v392_v9 = vsel %vm272_vm0, %v1916_v19, 0.0  ;;  %v858_v39 = vpop.permute.xlu2 %857  ;;  %v500_v42 = vrot.slane %v1680_v32, 1  ;;  %v613_v19 = vsel %vm578_vm2, %v610_v28, %v612_v57 }
  0x98   : > { %v935_v22 = vmul.f32 %v858_v39, %v711_v17  ;;  %v808_v53 = vpop.permute.xlu1 %807  ;;  %v803_v20 = vpop.permute.xlu0 %802  ;;  %v474_v24 = vrot.slane %v377_v26, 1  ;;  %v227_v5 = vadd.f32 %v195_v38, %v1449_v33  ;;  %v644_v2 = vrot.slane %v382_v35, 2 }
  0x99   : > { %v925_v34 = vmul.f32 %v808_v53, %v701_v29  ;;  %v924_v18 = vmul.f32 %v803_v20, %v700_v62  ;;  %v472_v3 = vrot.slane %v392_v9, 1  ;;  %v645_v27 = vrot.slane %v1680_v32, 2 }
  0x9a   : > { %v967_v36 = vsub.f32 %v935_v22, %v1446_v30  ;;  %v315_v17 = vrot.slane %v1701_v16, 7  ;;  %v316_v4 = vrot.slane %v237_v41, 7  ;;  %v714_v57 = vadd.f32 %v638_v14, %v569_v54 }
  0x9b   : > { %v957_v8 = vsub.f32 %v925_v34, %v1279_v56  ;;  %v956_v28 = vsub.f32 %v924_v18, %v1276_v55  ;;  %v501_v29 = vsel %vm433_vm1, %v499_v46, %v500_v42  ;;  %v1917_v62 = vrot.slane %v1489_v48, 1 }
  0x9c   : > { %1000 = vst.msk [vmem:[%s1404_s30 + $0xa0] sm:$0xff] %vm979_vm3, %v967_v36  ;;  %v619_v38 = vrot.slane %v377_v26, 2  ;;  %v617_v39 = vrot.slane %v392_v9, 2  ;;  %v301_v22 = vrot.slane %v227_v5, 7  ;;  %v704_v41 = vadd.f32 %v613_v19, %v559_v25 }
  0x9d   : > { %v476_v30 = vsel %vm433_vm1, %v474_v24, %v1917_v62  ;;  %990 = vst.msk [vmem:[%s1404_s30 + $0x50] sm:$0xff] %vm979_vm3, %v957_v8  ;;  %v703_v56 = vadd.f32 %v611_v43, %v558_v0  ;;  %v1918_v55 = vrot.slane %v1461_v13, 1  ;;  %v572_v54 = vadd.f32 %v501_v29, %v382_v35  ;;  %v1921_v62 = vld [vmem:[#allocation2_spill] sm:$0xff] }
  0x9e   : > { %989 = vst.msk [vmem:[%s1404_s30 + $0x48] sm:$0xff] %vm979_vm3, %v956_v28  ;;  %v646_v14 = vsel %vm578_vm2, %v644_v2, %v645_v27  ;;  %v1736_v9 = vsel %vm272_vm0, %v315_v17, %v316_v4  ;;  %v399_v5 = vsel %vm272_vm0, %v316_v4, 0.0  ;;  %v562_v43 = vadd.f32 %v476_v30, %v377_v26 }
  0x9f   : > { %v473_v18 = vsel %vm433_vm1, %v1918_v55, %v472_v3  ;;  %v873_v25 = vpop.permute.xlu2 %872  ;;  %v302_v3 = vsel %vm272_vm0, %v300_v15, %v301_v22  ;;  %v394_v0 = vsel %vm272_vm0, %v301_v22, 0.0  ;;  %v378_v35 = vsel %vm272_vm0, 0.0, %v300_v15 }
  0xa0   : > { %v938_v46 = vmul.f32 %v873_v25, %v714_v57  ;;  %v823_v53 = vpop.permute.xlu1 %822  ;;  %v818_v20 = vpop.permute.xlu0 %817  ;;  %v1919_v19 = vrot.slane %v1489_v48, 2  ;;  %v561_v26 = vadd.f32 %v473_v18, %v1461_v13  ;;  %v1920_v34 = vrot.slane %v1461_v13, 2 }
  0xa1   : > { %v928_v36 = vmul.f32 %v823_v53, %v704_v41  ;;  %v927_v4 = vmul.f32 %v818_v20, %v703_v56  ;;  %v505_v12 = vrot.slane %v1736_v9, 1  ;;  %v507_v15 = vrot.slane %v399_v5, 1 }
  0xa2   : > { %v621_v24 = vsel %vm578_vm2, %v619_v38, %v1919_v19  ;;  %v618_v2 = vsel %vm578_vm2, %v1920_v34, %v617_v39  ;;  %v970_v8 = vsub.f32 %v938_v46, %v1476_v60  ;;  %v480_v28 = vrot.slane %v302_v3, 1 }
  0xa3   : > { %v482_v57 = vrot.slane %v394_v0, 1  ;;  %v479_v48 = vrot.slane %v378_v35, 1  ;;  %v960_v29 = vsub.f32 %v928_v36, %v1308_v10  ;;  %v959_v30 = vsub.f32 %v927_v4, %v1921_v62 }
  0xa4   : > { %v200_v13 = vadd.f32 %v1551_v63, %v1473_v31  ;;  %v201_v38 = vadd.f32 %v1557_v47, %v1476_v60  ;;  %1003 = vst.msk [vmem:[%s1404_s30 + $0xb8] sm:$0xff] %vm979_vm3, %v970_v8  ;;  %v717_v39 = vadd.f32 %v646_v14, %v572_v54  ;;  %v707_v22 = vadd.f32 %v621_v24, %v562_v43 }
  0xa5   : > { %v650_v41 = vrot.slane %v1736_v9, 2  ;;  %v652_v56 = vrot.slane %v399_v5, 2  ;;  %993 = vst.msk [vmem:[%s1404_s30 + $0x68] sm:$0xff] %vm979_vm3, %v960_v29  ;;  %v706_v55 = vadd.f32 %v618_v2, %v561_v26  ;;  %v508_v10 = vsel %vm433_vm1, %v505_v12, %v507_v15 }
  0xa6   : > { %v624_v18 = vrot.slane %v378_v35, 2  ;;  %v380_v25 = vsel %vm272_vm0, 0.0, %v306_v49  ;;  %992 = vst.msk [vmem:[%s1404_s30 + $0x60] sm:$0xff] %vm979_vm3, %v959_v30  ;;  %v483_v60 = vsel %vm433_vm1, %v480_v28, %v482_v57  ;;  %v625_v54 = vrot.slane %v302_v3, 2 }
  0xa7   : > { %v627_v14 = vrot.slane %v394_v0, 2  ;;  %v481_v5 = vsel %vm433_vm1, %v479_v48, %v480_v28  ;;  %v888_v43 = vpop.permute.xlu2 %887  ;;  %v232_v46 = vadd.f32 %v200_v13, %v1583_v6  ;;  %v1922_v53 = vrot.slane %v1497_v11, 7 }
  0xa8   : > { %v233_v19 = vadd.f32 %v201_v38, %v1586_v50  ;;  %v941_v61 = vmul.f32 %v888_v43, %v717_v39  ;;  %v838_v24 = vpop.permute.xlu1 %837  ;;  %v833_v49 = vpop.permute.xlu0 %832  ;;  %v575_v26 = vadd.f32 %v508_v10, %v1736_v9  ;;  %v653_v0 = vsel %vm578_vm2, %v650_v41, %v652_v56 }
  0xa9   : > { %v395_v20 = vsel %vm272_vm0, %v1922_v53, 0.0  ;;  %v489_v34 = vrot.slane %v380_v25, 1  ;;  %v931_v2 = vmul.f32 %v838_v24, %v707_v22  ;;  %v930_v36 = vmul.f32 %v833_v49, %v706_v55  ;;  %v1925_v49 = vld [vmem:[#allocation3_spill] sm:$0xff] }
  0xaa   : > { %v565_v4 = vadd.f32 %v483_v60, %v302_v3  ;;  %v564_v11 = vadd.f32 %v481_v5, %v378_v35  ;;  %v973_v15 = vsub.f32 %v941_v61, %v1583_v6  ;;  %v628_v8 = vsel %vm578_vm2, %v625_v54, %v627_v14 }
  0xab   : > { %v626_v28 = vsel %vm578_vm2, %v624_v18, %v625_v54  ;;  %v487_v57 = vrot.slane %v395_v20, 1  ;;  %v309_v48 = vrot.slane %v232_v46, 7  ;;  %v963_v29 = vsub.f32 %v931_v2, %v1372_v1 }
  0xac   : > { %v962_v62 = vsub.f32 %v930_v36, %v1342_v40  ;;  %v310_v30 = vrot.slane %v233_v19, 7  ;;  %1006 = vst.msk [vmem:[%s1404_s30 + $0xd0] sm:$0xff] %vm979_vm3, %v973_v15  ;;  %v720_v13 = vadd.f32 %v653_v0, %v575_v26  ;;  %v634_v38 = vrot.slane %v380_v25, 2 }
  0xad   : > { %996 = vst.msk [vmem:[%s1404_s30 + $0x80] sm:$0xff] %vm979_vm3, %v963_v29  ;;  %v710_v3 = vadd.f32 %v628_v8, %v565_v4  ;;  %v709_v6 = vadd.f32 %v626_v28, %v564_v11  ;;  %v491_v35 = vsel %vm433_vm1, %v489_v34, %v490_v7  ;;  %v632_v39 = vrot.slane %v395_v20, 2 }
  0xae   : > { %995 = vst.msk [vmem:[%s1404_s30 + $0x78] sm:$0xff] %vm979_vm3, %v962_v62  ;;  %v488_v40 = vsel %vm433_vm1, %v485_v37, %v487_v57  ;;  %v311_v22 = vsel %vm272_vm0, %v309_v48, %v310_v30  ;;  %v397_v56 = vsel %vm272_vm0, %v310_v30, 0.0  ;;  %v381_v55 = vsel %vm272_vm0, 0.0, %v309_v48 }
  0xaf   : > { %v903_v1 = vpop.permute.xlu2 %902  ;;  %v568_v7 = vadd.f32 %v491_v35, %v380_v25  ;;  %v1923_v54 = vrot.slane %v1627_v21, 2  ;;  %v567_v43 = vadd.f32 %v488_v40, %v1539_v23  ;;  %v1924_v46 = vrot.slane %v1539_v23, 2 }
  0xb0   : > { %v944_v10 = vmul.f32 %v903_v1, %v720_v13  ;;  %v853_v18 = vpop.permute.xlu1 %852  ;;  %v848_v60 = vpop.permute.xlu0 %847  ;;  %v495_v19 = vrot.slane %v311_v22, 1  ;;  %v497_v61 = vrot.slane %v397_v56, 1  ;;  %v494_v24 = vrot.slane %v381_v55, 1 }
  0xb1   : > { %v636_v14 = vsel %vm578_vm2, %v634_v38, %v1923_v54  ;;  %v934_v5 = vmul.f32 %v853_v18, %v710_v3  ;;  %v933_v37 = vmul.f32 %v848_v60, %v709_v6  ;;  %v633_v53 = vsel %vm578_vm2, %v1924_v46, %v632_v39 }
  0xb2   : > { %v976_v20 = vsub.f32 %v944_v10, %v1612_v45  ;;  %v713_v26 = vadd.f32 %v636_v14, %v568_v7  ;;  %v712_v0 = vadd.f32 %v633_v53, %v567_v43  ;;  %v639_v34 = vrot.slane %v381_v55, 2 }
  0xb3   : > { %v966_v25 = vsub.f32 %v934_v5, %v1424_v59  ;;  %v965_v21 = vsub.f32 %v933_v37, %v1925_v49  ;;  %v383_v23 = vsel %vm272_vm0, 0.0, %v315_v17  ;;  %v498_v2 = vsel %vm433_vm1, %v495_v19, %v497_v61 }
  0xb4   : > { %1009 = vst.msk [vmem:[%s1404_s30 + $0xe8] sm:$0xff] %vm979_vm3, %v976_v20  ;;  %v640_v36 = vrot.slane %v311_v22, 2  ;;  %v642_v4 = vrot.slane %v397_v56, 2  ;;  %v496_v59 = vsel %vm433_vm1, %v494_v24, %v495_v19  ;;  %v1926_v11 = vrot.slane %v1642_v58, 7 }
  0xb5   : > { %999 = vst.msk [vmem:[%s1404_s30 + $0x98] sm:$0xff] %vm979_vm3, %v966_v25  ;;  %v206_v8 = vadd.f32 %v1669_v51, %v1609_v44  ;;  %v207_v16 = vadd.f32 %v1672_v52, %v1612_v45  ;;  %v504_v57 = vrot.slane %v383_v23, 1  ;;  %v571_v62 = vadd.f32 %v498_v2, %v311_v22 }
  0xb6   : > { %998 = vst.msk [vmem:[%s1404_s30 + $0x90] sm:$0xff] %vm979_vm3, %v965_v21  ;;  %v398_v15 = vsel %vm272_vm0, %v1926_v11, 0.0  ;;  %v570_v30 = vadd.f32 %v496_v59, %v381_v55  ;;  %v643_v13 = vsel %vm578_vm2, %v640_v36, %v642_v4  ;;  %v641_v58 = vsel %vm578_vm2, %v639_v34, %v640_v36 }
  0xb7   : > { %v502_v38 = vrot.slane %v398_v15, 1  ;;  %v318_v35 = vrot.slane %v206_v8, 7  ;;  %v319_v39 = vrot.slane %v207_v16, 7  ;;  %v716_v45 = vadd.f32 %v643_v13, %v571_v62 }
  0xb8   : > { %v868_v17 = vpop.permute.xlu1 %867  ;;  %v863_v28 = vpop.permute.xlu0 %862  ;;  %v715_v40 = vadd.f32 %v641_v58, %v570_v30  ;;  %v506_v1 = vsel %vm433_vm1, %v504_v57, %v505_v12  ;;  %v649_v22 = vrot.slane %v383_v23, 2 }
  0xb9   : > { %v937_v48 = vmul.f32 %v868_v17, %v713_v26  ;;  %v936_v29 = vmul.f32 %v863_v28, %v712_v0  ;;  %v503_v56 = vsel %vm433_vm1, %v500_v42, %v502_v38  ;;  %v400_v55 = vsel %vm272_vm0, %v319_v39, 0.0 }
  0xba   : > { %v384_v10 = vsel %vm272_vm0, 0.0, %v318_v35  ;;  %v574_v7 = vadd.f32 %v506_v1, %v383_v23  ;;  %v651_v14 = vsel %vm578_vm2, %v649_v22, %v650_v41  ;;  %v573_v42 = vadd.f32 %v503_v56, %v1680_v32 }
  0xbb   : > { %v969_v3 = vsub.f32 %v937_v48, %v1473_v31  ;;  %v968_v6 = vsub.f32 %v936_v29, %v1449_v33  ;;  %v647_v31 = vrot.slane %v398_v15, 2  ;;  %v320_v33 = vsel %vm272_vm0, %v318_v35, %v319_v39 }
  0xbc   : > { %v510_v37 = vrot.slane %v320_v33, 1  ;;  %v512_v43 = vrot.slane %v400_v55, 1  ;;  %v509_v46 = vrot.slane %v384_v10, 1  ;;  %v719_v19 = vadd.f32 %v651_v14, %v574_v7 }
  0xbd   : > { %1002 = vst.msk [vmem:[%s1404_s30 + $0xb0] sm:$0xff] %vm979_vm3, %v969_v3  ;;  %v648_v5 = vsel %vm578_vm2, %v645_v27, %v647_v31  ;;  %v655_v9 = vrot.slane %v320_v33, 2  ;;  %v657_v32 = vrot.slane %v400_v55, 2  ;;  %v654_v24 = vrot.slane %v384_v10, 2 }
  0xbe   : > { %1001 = vst.msk [vmem:[%s1404_s30 + $0xa8] sm:$0xff] %vm979_vm3, %v968_v6  ;;  %v718_v61 = vadd.f32 %v648_v5, %v573_v42  ;;  %v513_v41 = vsel %vm433_vm1, %v510_v37, %v512_v43  ;;  %v511_v27 = vsel %vm433_vm1, %v509_v46, %v510_v37 }
  0xbf   : > { %v576_v26 = vadd.f32 %v511_v27, %v384_v10  ;;  %v658_v0 = vsel %vm578_vm2, %v655_v9, %v657_v32  ;;  %v656_v34 = vsel %vm578_vm2, %v654_v24, %v655_v9 }
  0xc0   : > { %v883_v18 = vpop.permute.xlu1 %882  ;;  %v878_v60 = vpop.permute.xlu0 %877 }
  0xc1   : > { %v940_v12 = vmul.f32 %v883_v18, %v716_v45  ;;  %v939_v54 = vmul.f32 %v878_v60, %v715_v40  ;;  %v721_v4 = vadd.f32 %v656_v34, %v576_v26 }
  0xc3   : > { %v972_v53 = vsub.f32 %v940_v12, %v1557_v47  ;;  %v971_v20 = vsub.f32 %v939_v54, %v1551_v63  ;;  %v577_v63 = vadd.f32 %v513_v41, %v320_v33 }
  0xc5   : > { %1005 = vst.msk [vmem:[%s1404_s30 + $0xc8] sm:$0xff] %vm979_vm3, %v972_v53  ;;  %v722_v36 = vadd.f32 %v658_v0, %v577_v63 }
  0xc6   : > { %1004 = vst.msk [vmem:[%s1404_s30 + $0xc0] sm:$0xff] %vm979_vm3, %v971_v20 }
  0xc8   : > { %v898_v25 = vpop.permute.xlu1 %897  ;;  %v893_v49 = vpop.permute.xlu0 %892 }
  0xc9   : > { %v943_v47 = vmul.f32 %v898_v25, %v719_v19  ;;  %v942_v21 = vmul.f32 %v893_v49, %v718_v61 }
  0xcb   : > { %v975_v23 = vsub.f32 %v943_v47, %v1609_v44  ;;  %v974_v2 = vsub.f32 %v942_v21, %v1586_v50 }
  0xcd   : > { %1008 = vst.msk [vmem:[%s1404_s30 + $0xe0] sm:$0xff] %vm979_vm3, %v975_v23 }
  0xce   : > { %1007 = vst.msk [vmem:[%s1404_s30 + $0xd8] sm:$0xff] %vm979_vm3, %v974_v2 }
  0xd0   : > { %v913_v59 = vpop.permute.xlu1 %912  ;;  %v908_v11 = vpop.permute.xlu0 %907 }
  0xd1   : > { %v946_v15 = vmul.f32 %v913_v59, %v722_v36  ;;  %v945_v8 = vmul.f32 %v908_v11, %v721_v4 }
  0xd3   : > { %v978_v16 = vsub.f32 %v946_v15, %v1672_v52  ;;  %v977_v17 = vsub.f32 %v945_v8, %v1669_v51 }
  0xd5   : > { %1011 = vst.msk [vmem:[%s1404_s30 + $0xf8] sm:$0xff] %vm979_vm3, %v978_v16 }
  0xd6   : > { %1010 = vst.msk [vmem:[%s1404_s30 + $0xf0] sm:$0xff] %vm979_vm3, %v977_v17 }
  0xd7 PF: > { %s12_s9 = sadd.s32 1, %s1098_s9  }
  0xd8   : > { %p9_p4 = scmp.ge.s32.totalorder %s12_s9, 4  }
  0xda   :  { %11 = sbr.rel (!%p9_p4) target bundleno = 1 (0x1), region = 58 }

</bundles_post_ra>
